<compile_context>
chip_gen: v7x
topology: tpu7x:2x2x1
jax: 0.10.0
libtpu: 0.0.40
codegen_flags: <defaults>
</compile_context>

<pallas_src>
import functools

import jax
import jax.numpy as jnp
from jax.experimental import pallas as pl
from jax.experimental.pallas import tpu as pltpu


# ---------------------------------------------------------------------------
# Kernels
# ---------------------------------------------------------------------------

def _ln_kernel(x_ref, a_ref, b_ref, o_ref, *, eps, hidden):
    """General path: one logical row per physical row (lane axis = hidden)."""
    x = x_ref[...].astype(jnp.float32)                       # (T, hidden)
    mean = jnp.mean(x, axis=-1, keepdims=True)               # (T, 1)
    diff = x - mean
    # torch.std is unbiased: divide by (N - 1).  hidden == 1 -> 0/0 = nan, as in torch.
    var = jnp.sum(diff * diff, axis=-1, keepdims=True) / jnp.float32(hidden - 1)
    # One reciprocal per row instead of a per-element divide.
    inv = pl.reciprocal(jnp.sqrt(var) + jnp.float32(eps), approx=False)
    a = a_ref[...].astype(jnp.float32)                       # (1, hidden)
    b = b_ref[...].astype(jnp.float32)
    o_ref[...] = (diff * inv * a + b).astype(o_ref.dtype)


def _ln_kernel_packed(x_ref, a_ref, b_ref, s_ref, st_ref, o_ref, *, eps, hidden):
    """Lane-dense path: `pack` logical rows per 128-lane physical row.

    s_ref  : (width, pack) 0/1 segment matrix  (lane -> group)
    st_ref : (pack, width) its transpose       (group -> lanes, broadcast-back)
    """
    hi_prec = jax.lax.Precision.HIGHEST
    x = x_ref[...].astype(jnp.float32)                       # (T, width)
    s = s_ref[...]                                           # (width, pack)
    st = st_ref[...]                                         # (pack, width)

    # Per-logical-row sums via MXU (exact: 0/1 weights, f32 accumulate).
    gsum = jnp.dot(x, s, preferred_element_type=jnp.float32,
                   precision=hi_prec)                        # (T, pack)
    mean_b = jnp.dot(gsum * jnp.float32(1.0 / hidden), st,
                     preferred_element_type=jnp.float32,
                     precision=hi_prec)                      # (T, width)
    diff = x - mean_b
    gss = jnp.dot(diff * diff, s, preferred_element_type=jnp.float32,
                  precision=hi_prec)                         # (T, pack)
    var = gss / jnp.float32(hidden - 1)                      # unbiased, as torch
    inv = pl.reciprocal(jnp.sqrt(var) + jnp.float32(eps), approx=False)  # (T, pack)
    inv_b = jnp.dot(inv, st, preferred_element_type=jnp.float32,
                    precision=hi_prec)                       # (T, width)
    a = a_ref[...].astype(jnp.float32)                       # (1, width) tiled scale
    b = b_ref[...].astype(jnp.float32)                       # (1, width) tiled bias
    o_ref[...] = (diff * inv_b * a + b).astype(o_ref.dtype)


# ---------------------------------------------------------------------------
# Wrapper
# ---------------------------------------------------------------------------

_VMEM_TILE_BUDGET = 24 * 1024 * 1024   # bytes for the 4 DMA buffers + f32 temps
_VMEM_LIMIT_BYTES = 48 * 1024 * 1024   # fits v5e/v6e (128 MiB) and v7x (64 MiB)


def _round_up(x, m):
    return ((x + m - 1) // m) * m


def _pick_tile_rows(n_rows, width, itemsize):
    """Largest row tile (multiple of 8, <=1024) whose pipeline footprint fits VMEM."""
    # 2x input + 2x output double-buffers in x.dtype, plus ~3 f32 temporaries.
    per_row = width * (4 * itemsize + 3 * 4)
    t = max(8, min(1024, (_VMEM_TILE_BUDGET // max(per_row, 1)) // 8 * 8))
    t = min(t, _round_up(n_rows, 8))            # don't tile past the data
    if n_rows >= 16:                            # keep >=2 grid steps (v7x megacore)
        t = min(t, _round_up((n_rows + 1) // 2, 8))
    return t


def layer_norm(x, a_2, b_2, eps=1e-07):
    """x: (..., hidden). a_2, b_2: (hidden,). Returns same shape/dtype as x."""
    orig_shape = x.shape
    hidden = orig_shape[-1]
    rows = 1
    for d in orig_shape[:-1]:
        rows *= d
    x2 = x.reshape(rows, hidden)
    a2 = a_2.reshape(1, hidden)
    b2 = b_2.reshape(1, hidden)
    itemsize = jnp.dtype(x.dtype).itemsize

    compiler_params = pltpu.CompilerParams(
        dimension_semantics=("parallel",),
        vmem_limit_bytes=_VMEM_LIMIT_BYTES,
    )

    use_packed = (hidden >= 2) and (hidden < 128) and (128 % hidden == 0)

    if use_packed:
        # --- lane-dense path: fold `pack` logical rows into one 128-lane row ---
        pack = 128 // hidden
        width = pack * hidden                                  # == 128
        # Tiny pad (< pack rows) only when needed so rows fold evenly into lanes.
        rows_pad = _round_up(rows, pack)
        if rows_pad != rows:
            x2 = jnp.pad(x2, ((0, rows_pad - rows), (0, 0)))
        n_prows = rows_pad // pack
        xp = x2.reshape(n_prows, width)
        tile_rows = _pick_tile_rows(n_prows, width, itemsize)
        a_t = jnp.tile(a2, (1, pack))                          # (1, width)
        b_t = jnp.tile(b2, (1, pack))
        lane_grp = jnp.arange(width, dtype=jnp.int32) // hidden
        seg = (lane_grp[:, None] == jnp.arange(pack, dtype=jnp.int32)[None, :]
               ).astype(jnp.float32)                           # (width, pack)
        seg_t = seg.T                                          # (pack, width)
        grid = (pl.cdiv(n_prows, tile_rows),)                  # partial last block OK

        out = pl.pallas_call(
            functools.partial(_ln_kernel_packed, eps=eps, hidden=hidden),
            out_shape=jax.ShapeDtypeStruct((n_prows, width), x.dtype),
            grid_spec=pltpu.PrefetchScalarGridSpec(
                num_scalar_prefetch=0,
                grid=grid,
                in_specs=[
                    pl.BlockSpec((tile_rows, width), lambda i: (i, 0)),
                    pl.BlockSpec((1, width), lambda i: (0, 0)),
                    pl.BlockSpec((1, width), lambda i: (0, 0)),
                    pl.BlockSpec((width, pack), lambda i: (0, 0)),
                    pl.BlockSpec((pack, width), lambda i: (0, 0)),
                ],
                out_specs=pl.BlockSpec((tile_rows, width), lambda i: (i, 0)),
            ),
            compiler_params=compiler_params,
        )(xp, a_t, b_t, seg, seg_t)
        out = out.reshape(rows_pad, hidden)
        if rows_pad != rows:
            out = out[:rows]
        return out.reshape(orig_shape)

    # --- general path: hidden kept whole on the lane axis ---
    # TODO(synk): for very large hidden (>~16K f32) add a second "arbitrary" grid
    # axis over hidden with scratch sum/sumsq accumulators instead of one block.
    tile_rows = _pick_tile_rows(rows, hidden, itemsize)
    grid = (pl.cdiv(rows, tile_rows),)          # no row padding; last block masked

    out = pl.pallas_call(
        functools.partial(_ln_kernel, eps=eps, hidden=hidden),
        out_shape=jax.ShapeDtypeStruct((rows, hidden), x.dtype),
        grid_spec=pltpu.PrefetchScalarGridSpec(
            num_scalar_prefetch=0,
            grid=grid,
            in_specs=[
                pl.BlockSpec((tile_rows, hidden), lambda i: (i, 0)),
                pl.BlockSpec((1, hidden), lambda i: (0, 0)),
                pl.BlockSpec((1, hidden), lambda i: (0, 0)),
            ],
            out_specs=pl.BlockSpec((tile_rows, hidden), lambda i: (i, 0)),
        ),
        compiler_params=compiler_params,
    )(x2, a2, b2)
    return out.reshape(orig_shape)


# ---------------------------------------------------------------------------
# Demo / self-check
# ---------------------------------------------------------------------------

if __name__ == "__main__":
    key = jax.random.PRNGKey(0)
    batch, seq, hidden = 2, 8, 32

    x = jax.random.normal(key, (batch, seq, hidden), dtype=jnp.float32)
    # Parameters as in nn.Module __init__: ones / zeros of shape (hidden,)
    a_2 = jnp.ones((hidden,), dtype=jnp.float32)
    b_2 = jnp.zeros((hidden,), dtype=jnp.float32)
    eps = 1e-07

    out = layer_norm(x, a_2, b_2, eps=eps)
    jax.block_until_ready(out)

    # Reference (pure JAX, same unbiased-std semantics as torch)
    mean = jnp.mean(x, axis=-1, keepdims=True)
    std = jnp.sqrt(jnp.sum((x - mean) ** 2, axis=-1, keepdims=True) / (hidden - 1))
    ref = a_2 * (x - mean) / (std + eps) + b_2
    assert out.shape == x.shape and out.dtype == x.dtype
    assert jnp.allclose(out, ref, atol=1e-5, rtol=1e-5), "mismatch vs reference"

    print("KERNEL_OK")
</pallas_src>

<mosaic_0001>
module attributes {stable_mosaic.version = 11 : i64} {
  func.func @_ln_kernel_packed(%arg0: i32, %arg1: memref<8x128xf32, #tpu.memory_space<vmem>>, %arg2: memref<1x128xf32, #tpu.memory_space<vmem>>, %arg3: memref<1x128xf32, #tpu.memory_space<vmem>>, %arg4: memref<128x4xf32, #tpu.memory_space<vmem>>, %arg5: memref<4x128xf32, #tpu.memory_space<vmem>>, %arg6: memref<8x128xf32, #tpu.memory_space<vmem>>) attributes {dimension_semantics = [#tpu.dimension_semantics<parallel>], iteration_bounds = array<i64: 1>, scalar_prefetch = 0 : i64, scratch_operands = 0 : i64, tpu.core_type = #tpu.core_type<tc>, window_params = [{transform_indices = @transform_0, window_bounds = array<i64: 8, 128>}, {pipeline_mode = #tpu.pipeline_mode<synchronous>, transform_indices = @transform_1, window_bounds = array<i64: 1, 128>}, {pipeline_mode = #tpu.pipeline_mode<synchronous>, transform_indices = @transform_2, window_bounds = array<i64: 1, 128>}, {pipeline_mode = #tpu.pipeline_mode<synchronous>, transform_indices = @transform_3, window_bounds = array<i64: 128, 4>}, {pipeline_mode = #tpu.pipeline_mode<synchronous>, transform_indices = @transform_4, window_bounds = array<i64: 4, 128>}, {transform_indices = @transform_5, window_bounds = array<i64: 8, 128>}]} {
    %c0 = arith.constant 0 : index
    %c0_0 = arith.constant 0 : index
    %0 = vector.load %arg1[%c0, %c0_0] : memref<8x128xf32, #tpu.memory_space<vmem>>, vector<8x128xf32>
    %c0_1 = arith.constant 0 : index
    %c0_2 = arith.constant 0 : index
    %1 = vector.load %arg4[%c0_1, %c0_2] : memref<128x4xf32, #tpu.memory_space<vmem>>, vector<128x4xf32>
    %c0_3 = arith.constant 0 : index
    %c0_4 = arith.constant 0 : index
    %2 = vector.load %arg5[%c0_3, %c0_4] : memref<4x128xf32, #tpu.memory_space<vmem>>, vector<4x128xf32>
    %cst = arith.constant dense<0.000000e+00> : vector<8x4xf32>
    %3 = tpu.matmul %0, %1, %cst {dimension_numbers = #tpu.dot_dimension_numbers<[1], [0], [0], [1], [0, 0, 1, 1], [], []>, precision = #tpu.contract_precision<fp32>} : vector<8x128xf32>, vector<128x4xf32>, vector<8x4xf32> -> vector<8x4xf32>
    %cst_5 = arith.constant 3.125000e-02 : f32
    %4 = vector.broadcast %cst_5 : f32 to vector<8x4xf32>
    %5 = arith.mulf %3, %4 : vector<8x4xf32>
    %cst_6 = arith.constant dense<0.000000e+00> : vector<8x128xf32>
    %6 = tpu.matmul %5, %2, %cst_6 {dimension_numbers = #tpu.dot_dimension_numbers<[1], [0], [0], [1], [0, 0, 1, 1], [], []>, precision = #tpu.contract_precision<fp32>} : vector<8x4xf32>, vector<4x128xf32>, vector<8x128xf32> -> vector<8x128xf32>
    %7 = arith.subf %0, %6 : vector<8x128xf32>
    %8 = arith.mulf %7, %7 : vector<8x128xf32>
    %cst_7 = arith.constant dense<0.000000e+00> : vector<8x4xf32>
    %9 = tpu.matmul %8, %1, %cst_7 {dimension_numbers = #tpu.dot_dimension_numbers<[1], [0], [0], [1], [0, 0, 1, 1], [], []>, precision = #tpu.contract_precision<fp32>} : vector<8x128xf32>, vector<128x4xf32>, vector<8x4xf32> -> vector<8x4xf32>
    %cst_8 = arith.constant 3.100000e+01 : f32
    %10 = vector.broadcast %cst_8 : f32 to vector<8x4xf32>
    %11 = arith.divf %9, %10 : vector<8x4xf32>
    %12 = math.sqrt %11 : vector<8x4xf32>
    %cst_9 = arith.constant 1.000000e-07 : f32
    %13 = vector.broadcast %cst_9 : f32 to vector<8x4xf32>
    %14 = arith.addf %12, %13 : vector<8x4xf32>
    %15 = tpu.reciprocal %14 : vector<8x4xf32> -> vector<8x4xf32>
    %cst_10 = arith.constant dense<0.000000e+00> : vector<8x128xf32>
    %16 = tpu.matmul %15, %2, %cst_10 {dimension_numbers = #tpu.dot_dimension_numbers<[1], [0], [0], [1], [0, 0, 1, 1], [], []>, precision = #tpu.contract_precision<fp32>} : vector<8x4xf32>, vector<4x128xf32>, vector<8x128xf32> -> vector<8x128xf32>
    %c0_11 = arith.constant 0 : index
    %c0_12 = arith.constant 0 : index
    %17 = vector.load %arg2[%c0_11, %c0_12] : memref<1x128xf32, #tpu.memory_space<vmem>>, vector<1x128xf32>
    %c0_13 = arith.constant 0 : index
    %c0_14 = arith.constant 0 : index
    %18 = vector.load %arg3[%c0_13, %c0_14] : memref<1x128xf32, #tpu.memory_space<vmem>>, vector<1x128xf32>
    %19 = arith.mulf %7, %16 : vector<8x128xf32>
    %20 = vector.broadcast %17 : vector<1x128xf32> to vector<8x128xf32>
    %21 = arith.mulf %19, %20 : vector<8x128xf32>
    %22 = vector.broadcast %18 : vector<1x128xf32> to vector<8x128xf32>
    %23 = arith.addf %21, %22 : vector<8x128xf32>
    %c0_15 = arith.constant 0 : index
    %c0_16 = arith.constant 0 : index
    %24 = vector.load %arg6[%c0_15, %c0_16] : memref<8x128xf32, #tpu.memory_space<vmem>>, vector<8x128xf32>
    tpu.vector_store %arg6[%c0_15, %c0_16], %23 {strides = array<i32>} : memref<8x128xf32, #tpu.memory_space<vmem>>, vector<8x128xf32>,
    return
  }
  func.func @transform_0(%arg0: i32) -> (i32, i32) {
    %c0_i32 = arith.constant 0 : i32
    %c0_i32_0 = arith.constant 0 : i32
    return %arg0, %c0_i32 : i32, i32
  }
  func.func @transform_1(%arg0: i32) -> (i32, i32) {
    %c0_i32 = arith.constant 0 : i32
    %c0_i32_0 = arith.constant 0 : i32
    %c0_i32_1 = arith.constant 0 : i32
    return %c0_i32, %c0_i32_0 : i32, i32
  }
  func.func @transform_2(%arg0: i32) -> (i32, i32) {
    %c0_i32 = arith.constant 0 : i32
    %c0_i32_0 = arith.constant 0 : i32
    %c0_i32_1 = arith.constant 0 : i32
    return %c0_i32, %c0_i32_0 : i32, i32
  }
  func.func @transform_3(%arg0: i32) -> (i32, i32) {
    %c0_i32 = arith.constant 0 : i32
    %c0_i32_0 = arith.constant 0 : i32
    %c0_i32_1 = arith.constant 0 : i32
    return %c0_i32, %c0_i32_0 : i32, i32
  }
  func.func @transform_4(%arg0: i32) -> (i32, i32) {
    %c0_i32 = arith.constant 0 : i32
    %c0_i32_0 = arith.constant 0 : i32
    %c0_i32_1 = arith.constant 0 : i32
    return %c0_i32, %c0_i32_0 : i32, i32
  }
  func.func @transform_5(%arg0: i32) -> (i32, i32) {
    %c0_i32 = arith.constant 0 : i32
    %c0_i32_0 = arith.constant 0 : i32
    return %arg0, %c0_i32 : i32, i32
  }
}

</mosaic_0001>

<bundles_post_ra>
// kernel: tpu_custom_call.1
= control target key start
LH: loop header
LB: loop body
LE: loop exit
PB: predicated region body
PF: predicated region fallthrough
CT: control target
= control target key end

     0   :  { %10 = vsyncpa [#allocation3], 0  ;;  %v3344_v2 = vmov 0.0|0.0   ;;  %vm3345_vm0 = vmmov 0   ;;  %v3346_v11 = vmov 0.0   ;;  %vm685_vm1 = vcmask 1043456   ;;  %s3905_s0 = inlined_call_operand.vmem [shape: f32[4,128], index: 0, kind: input, shape index: {}]   ;;  %s3906_s1 = inlined_call_operand.vmem [shape: f32[1,128], index: 1, kind: input, shape index: {}]   ;;  %s3907_s2 = inlined_call_operand.vmem [shape: f32[1,128], index: 2, kind: input, shape index: {}]   ;;  %s3908_s3 = inlined_call_operand.vmem [shape: f32[128,4], index: 3, kind: input, shape index: {}]   ;;  %s3909_s4 = inlined_call_operand.vmem [shape: f32[4,128], index: 4, kind: input, shape index: {}]   ;;  %s3910_s5 = inlined_call_operand.hbm [shape: f32[4,128], index: 5, kind: output, shape index: {}]  }
   0x1   :  { %v22_v0 = vld [vmem:[%s3908_s3] sm:$0xff]  ;;  %v23_v1 = vld [vmem:[%s3908_s3 + $0x8] sm:$0xff]  ;;  %2982 = vmatprep.subr.bf16.mxu0 %v3344_v2  ;;  %v24_v5 = vld [vmem:[%s3908_s3 + $0x10] sm:$0xff]  ;;  %2534 = vmatprep.mubr.msk.f32.mxu0 %vm3345_vm0, %v3346_v11  ;;  %vm681_vm2 = vcmask 31744  }
   0x2   :  { %v40_v3 = vand.u32 4294901760, %v22_v0  ;;  %v43_v4 = vand.u32 4294901760, %v23_v1  ;;  %v25_v6 = vld [vmem:[%s3908_s3 + $0x18] sm:$0xff]  ;;  %v46_v7 = vand.u32 4294901760, %v24_v5  ;;  %v26_v9 = vld [vmem:[%s3908_s3 + $0x20] sm:$0xff]  ;;  %v27_v10 = vld [vmem:[%s3908_s3 + $0x28] sm:$0xff]  ;;  %2712 = vmatprep.subr.mxu1 %v3346_v11  ;;  %2714 = vmatprep.mubr.msk.f32.mxu1 %vm3345_vm0, %v3346_v11 }
   0x3   :  { %v49_v8 = vand.u32 4294901760, %v25_v6  ;;  %v52_v14 = vand.u32 4294901760, %v26_v9  ;;  %v55_v15 = vand.u32 4294901760, %v27_v10  ;;  %v28_v16 = vld [vmem:[%s3908_s3 + $0x30] sm:$0xff]  ;;  %v29_v17 = vld [vmem:[%s3908_s3 + $0x38] sm:$0xff]  ;;  %v30_v21 = vld [vmem:[%s3908_s3 + $0x40] sm:$0xff] }
   0x4   :  { %v3402_v12 = vpack.c.bf16 %v43_v4, %v40_v3  ;;  %v58_v19 = vand.u32 4294901760, %v28_v16  ;;  %v61_v20 = vand.u32 4294901760, %v29_v17  ;;  %v31_v22 = vld [vmem:[%s3908_s3 + $0x48] sm:$0xff]  ;;  %v3429_v23 = vld [vmem:[%s3905_s0] sm:$0xff]  ;;  %v32_v24 = vld [vmem:[%s3908_s3 + $0x50] sm:$0xff]  ;;  %v64_v25 = vand.u32 4294901760, %v30_v21 }
   0x5   :  { %v3407_v13 = vpack.c.bf16 %v49_v8, %v46_v7  ;;  %v3417_v18 = vpack.c.bf16 %v55_v15, %v52_v14  ;;  %v67_v26 = vand.u32 4294901760, %v31_v22  ;;  %v33_v27 = vld [vmem:[%s3908_s3 + $0x58] sm:$0xff]  ;;  %v34_v28 = vld [vmem:[%s3908_s3 + $0x60] sm:$0xff]  ;;  %v35_v29 = vld [vmem:[%s3908_s3 + $0x68] sm:$0xff]  ;;  %v3453_v33 = vand.u32 4294901760, %v3429_v23 }
   0x6   :  { %2984 = vmatpush3.bf16.msra.mxu0 %v3402_v12  ;;  %v3444_v30 = vpack.c.bf16 %v61_v20, %v58_v19  ;;  %v36_v31 = vld [vmem:[%s3908_s3 + $0x70] sm:$0xff]  ;;  %v37_v32 = vld [vmem:[%s3908_s3 + $0x78] sm:$0xff]  ;;  %v3455_v34 = vsub.f32 %v22_v0, %v40_v3  ;;  %v3457_v35 = vsub.f32 %v23_v1, %v43_v4  ;;  %v70_v36 = vand.u32 4294901760, %v32_v24 }
   0x7   :  { %2985 = vmatprep.subr.bf16.mxu0 %v3344_v2  ;;  %v73_v37 = vand.u32 4294901760, %v33_v27  ;;  %v76_v38 = vand.u32 4294901760, %v34_v28  ;;  %v79_v39 = vand.u32 4294901760, %v35_v29  ;;  %v82_v40 = vand.u32 4294901760, %v36_v31 }
   0x8   :  { %v85_v41 = vand.u32 4294901760, %v37_v32  ;;  %v3460_v42 = vsub.f32 %v24_v5, %v46_v7  ;;  %v3462_v43 = vsub.f32 %v25_v6, %v49_v8  ;;  %v3465_v44 = vpack.c.bf16 %v67_v26, %v64_v25 }
   0x9   :  { %v3469_v45 = vsub.f32 %v3429_v23, %v3453_v33  ;;  %v133_v46 = vand.u32 4294901760, %v3455_v34  ;;  %v140_v47 = vand.u32 4294901760, %v3457_v35  ;;  %v3474_v48 = vsub.f32 %v26_v9, %v52_v14 }
   0xa   :  { %2987 = vmatpush3.bf16.msra.mxu0 %v3407_v13  ;;  %v3476_v49 = vpack.c.bf16 %v73_v37, %v70_v36  ;;  %v3478_v50 = vpack.c.bf16 %v79_v39, %v76_v38  ;;  %v3480_v51 = vpack.c.bf16 %v85_v41, %v82_v40  ;;  %v147_v52 = vand.u32 4294901760, %v3460_v42 }
   0xb   :  { %2988 = vmatprep.subr.bf16.mxu0 %v3344_v2  ;;  %v154_v53 = vand.u32 4294901760, %v3462_v43  ;;  %v3484_v54 = vsub.f32 %v27_v10, %v55_v15  ;;  %v122_v55 = vand.u32 4294901760, %v3469_v45  ;;  %v134_v56 = vsub.f32 %v3455_v34, %v133_v46 }
   0xc   :  { %v141_v57 = vsub.f32 %v3457_v35, %v140_v47  ;;  %v3490_v58 = vsub.f32 %v28_v16, %v58_v19  ;;  %v161_v59 = vand.u32 4294901760, %v3474_v48  ;;  %v3494_v60 = vsub.f32 %v29_v17, %v61_v20 }
   0xd   :  { %v3496_v61 = vsub.f32 %v30_v21, %v64_v25  ;;  %v3498_v62 = vsub.f32 %v31_v22, %v67_v26  ;;  %v3500_v63 = vsub.f32 %v32_v24, %v70_v36  ;;  %v3502_v0 = vsub.f32 %v33_v27, %v73_v37 }
   0xe   :  { %2990 = vmatpush3.bf16.msra.mxu0 %v3417_v18  ;;  %v3504_v1 = vsub.f32 %v34_v28, %v76_v38  ;;  %v3506_v3 = vsub.f32 %v35_v29, %v79_v39  ;;  %v148_v4 = vsub.f32 %v3460_v42, %v147_v52  ;;  %v155_v5 = vsub.f32 %v3462_v43, %v154_v53 }
   0xf   :  { %2991 = vmatprep.subr.bf16.mxu0 %v3344_v2  ;;  %v3510_v6 = vsub.f32 %v36_v31, %v82_v40  ;;  %v3512_v7 = vsub.f32 %v37_v32, %v85_v41  ;;  %v123_v8 = vsub.f32 %v3469_v45, %v122_v55  ;;  %v135_v9 = vand.u32 4294901760, %v134_v56 }
  0x10   :  { %v168_v10 = vand.u32 4294901760, %v3484_v54  ;;  %v175_v14 = vand.u32 4294901760, %v3490_v58  ;;  %v142_v15 = vand.u32 4294901760, %v141_v57  ;;  %v182_v16 = vand.u32 4294901760, %v3494_v60 }
  0x11   :  { %v189_v17 = vand.u32 4294901760, %v3496_v61  ;;  %v196_v19 = vand.u32 4294901760, %v3498_v62  ;;  %v203_v20 = vand.u32 4294901760, %v3500_v63  ;;  %v210_v21 = vand.u32 4294901760, %v3502_v0 }
  0x12   :  { %2993 = vmatpush3.bf16.msra.mxu0 %v3444_v30  ;;  %v217_v22 = vand.u32 4294901760, %v3504_v1  ;;  %v224_v24 = vand.u32 4294901760, %v3506_v3  ;;  %v231_v25 = vand.u32 4294901760, %v3510_v6  ;;  %v238_v26 = vand.u32 4294901760, %v3512_v7 }
  0x13   :  { %2994 = vmatprep.subr.bf16.mxu0 %v3344_v2  ;;  %v3530_v27 = vpack.c.bf16 %v140_v47, %v133_v46  ;;  %v3532_v28 = vpack.c.bf16 %v154_v53, %v147_v52  ;;  %v3535_v29 = vpack.c.bf16 %v168_v10, %v161_v59  ;;  %v3537_v31 = vpack.c.bf16 %v182_v16, %v175_v14 }
  0x14   :  { %v3539_v32 = vpack.c.bf16 %v196_v19, %v189_v17  ;;  %v3541_v36 = vpack.c.bf16 %v210_v21, %v203_v20  ;;  %v3544_v37 = vpack.c.bf16 %v224_v24, %v217_v22  ;;  %v3546_v38 = vpack.c.bf16 %v238_v26, %v231_v25 }
  0x15   :  { %v124_v39 = vand.u32 4294901760, %v123_v8  ;;  %v162_v40 = vsub.f32 %v3474_v48, %v161_v59  ;;  %v3550_v41 = vpack.c.bf16 %v142_v15, %v135_v9  ;;  %v149_v46 = vand.u32 4294901760, %v148_v4 }
  0x16   :  { %2996 = vmatpush3.bf16.msra.mxu0 %v3465_v44  ;;  %v156_v47 = vand.u32 4294901760, %v155_v5  ;;  %v169_v52 = vsub.f32 %v3484_v54, %v168_v10  ;;  %v176_v53 = vsub.f32 %v3490_v58, %v175_v14  ;;  %v183_v59 = vsub.f32 %v3494_v60, %v182_v16 }
  0x17   :  { %2997 = vmatprep.subr.bf16.mxu0 %v3344_v2  ;;  %v163_v57 = vand.u32 4294901760, %v162_v40  ;;  %v190_v10 = vsub.f32 %v3496_v61, %v189_v17  ;;  %v197_v14 = vsub.f32 %v3498_v62, %v196_v19  ;;  %v204_v15 = vsub.f32 %v3500_v63, %v203_v20 }
  0x18   :  { %v3556_v56 = vpack.c.bf16 %v156_v47, %v149_v46  ;;  %v170_v8 = vand.u32 4294901760, %v169_v52  ;;  %v177_v4 = vand.u32 4294901760, %v176_v53  ;;  %v184_v9 = vand.u32 4294901760, %v183_v59 }
  0x19   :  { %v198_v40 = vand.u32 4294901760, %v197_v14  ;;  %v211_v46 = vsub.f32 %v3502_v0, %v210_v21  ;;  %v218_v47 = vsub.f32 %v3504_v1, %v217_v22  ;;  %v205_v19 = vand.u32 4294901760, %v204_v15 }
  0x1a   :  { %2999 = vmatpush3.bf16.msra.mxu0 %v3476_v49  ;;  %v3563_v5 = vpack.c.bf16 %v170_v8, %v163_v57  ;;  %v3570_v16 = vpack.c.bf16 %v184_v9, %v177_v4  ;;  %v225_v20 = vsub.f32 %v3506_v3, %v224_v24  ;;  %v232_v8 = vsub.f32 %v3510_v6, %v231_v25 }
  0x1b   :  { %3000 = vmatprep.subr.bf16.mxu0 %v3344_v2  ;;  %v212_v52 = vand.u32 4294901760, %v211_v46  ;;  %v219_v53 = vand.u32 4294901760, %v218_v47  ;;  %v239_v22 = vsub.f32 %v3512_v7, %v238_v26  ;;  %v3597_v25 = vpack.c.bf16 %v3457_v35, %v3455_v34 }
  0x1c   :  { %v226_v21 = vand.u32 4294901760, %v225_v20  ;;  %v233_v4 = vand.u32 4294901760, %v232_v8  ;;  %v3604_v26 = vpack.c.bf16 %v3462_v43, %v3460_v42  ;;  %v3612_v34 = vpack.c.bf16 %v3484_v54, %v3474_v48 }
  0x1d   :  { %v3581_v57 = vpack.c.bf16 %v212_v52, %v205_v19  ;;  %v240_v24 = vand.u32 4294901760, %v239_v22  ;;  %v3618_v35 = vpack.c.bf16 %v3494_v60, %v3490_v58  ;;  %v3624_v42 = vpack.c.bf16 %v3498_v62, %v3496_v61 }
  0x1e   :  { %3002 = vmatpush3.bf16.msra.mxu0 %v3478_v50  ;;  %v3587_v59 = vpack.c.bf16 %v226_v21, %v219_v53  ;;  %v3630_v43 = vpack.c.bf16 %v3502_v0, %v3500_v63  ;;  %v3636_v48 = vpack.c.bf16 %v3506_v3, %v3504_v1  ;;  %v3642_v54 = vpack.c.bf16 %v3512_v7, %v3510_v6 }
  0x1f   :  { %3003 = vmatprep.subr.bf16.mxu0 %v3344_v2  ;;  %v3591_v9 = vpack.c.bf16 %v240_v24, %v233_v4 }
  0x22   :  { %3005 = vmatpush3.bf16.msra.mxu0 %v3480_v51 }
  0x23   :  { %3006 = vmatprep.subr.bf16.mxu0 %v3344_v2 }
  0x25   :  { %2535 = vmatmul.mubr.f32.vlgmr.msra.gmra.mrb[0].mxu0 %v124_v39  ;;  %v191_v39 = vand.u32 4294901760, %v190_v10 }
  0x26   :  { %3008 = vmatpush3.bf16.msra.mxu0 %v3550_v41  ;;  %2569 = vmatprep.mubr.msk.f32.mxu0 %vm3345_vm0, %v3346_v11 }
  0x27   :  { %3009 = vmatprep.subr.bf16.mxu0 %v3344_v2  ;;  %v3576_v17 = vpack.c.bf16 %v198_v40, %v191_v39 }
  0x2a   :  { %3011 = vmatpush3.bf16.msra.mxu0 %v3556_v56 }
  0x2b   :  { %3012 = vmatprep.subr.bf16.mxu0 %v3344_v2 }
  0x2e   :  { %3014 = vmatpush3.bf16.msra.mxu0 %v3563_v5 }
  0x2f   :  { %3015 = vmatprep.subr.bf16.mxu0 %v3344_v2 }
  0x32   :  { %3017 = vmatpush3.bf16.msra.mxu0 %v3570_v16 }
  0x33   :  { %3018 = vmatprep.subr.bf16.mxu0 %v3344_v2 }
  0x36   :  { %3020 = vmatpush3.bf16.msra.mxu0 %v3576_v17 }
  0x37   :  { %3021 = vmatprep.subr.bf16.mxu0 %v3344_v2 }
  0x3a   :  { %3023 = vmatpush3.bf16.msra.mxu0 %v3581_v57 }
  0x3b   :  { %3024 = vmatprep.subr.bf16.mxu0 %v3344_v2 }
  0x3e   :  { %3026 = vmatpush3.bf16.msra.mxu0 %v3587_v59 }
  0x3f   :  { %3027 = vmatprep.subr.bf16.mxu0 %v3344_v2 }
  0x42   :  { %3029 = vmatpush3.bf16.msra.mxu0 %v3591_v9 }
  0x43   :  { %3030 = vmatprep.subr.bf16.mxu0 %v3344_v2 }
  0x45   :  { %2570 = vmatmul.mubr.f32.vlgmr.msra.gmra.mrb[0].mxu0 %v3453_v33 }
  0x46   :  { %3032 = vmatpush3.bf16.msra.mxu0 %v3597_v25  ;;  %2604 = vmatprep.mubr.msk.f32.mxu0 %vm3345_vm0, %v3346_v11 }
  0x47   :  { %3033 = vmatprep.subr.bf16.mxu0 %v3344_v2 }
  0x4a   :  { %3035 = vmatpush3.bf16.msra.mxu0 %v3604_v26 }
  0x4b   :  { %3036 = vmatprep.subr.bf16.mxu0 %v3344_v2 }
  0x4e   :  { %3038 = vmatpush3.bf16.msra.mxu0 %v3612_v34 }
  0x4f   :  { %3039 = vmatprep.subr.bf16.mxu0 %v3344_v2 }
  0x52   :  { %3041 = vmatpush3.bf16.msra.mxu0 %v3618_v35 }
  0x53   :  { %3042 = vmatprep.subr.bf16.mxu0 %v3344_v2 }
  0x56   :  { %3044 = vmatpush3.bf16.msra.mxu0 %v3624_v42 }
  0x57   :  { %3045 = vmatprep.subr.bf16.mxu0 %v3344_v2 }
  0x5a   :  { %3047 = vmatpush3.bf16.msra.mxu0 %v3630_v43 }
  0x5b   :  { %3048 = vmatprep.subr.bf16.mxu0 %v3344_v2 }
  0x5e   :  { %3050 = vmatpush3.bf16.msra.mxu0 %v3636_v48 }
  0x5f   :  { %3051 = vmatprep.subr.bf16.mxu0 %v3344_v2 }
  0x62   :  { %3053 = vmatpush3.bf16.msra.mxu0 %v3642_v54 }
  0x63   :  { %3054 = vmatprep.subr.bf16.mxu0 %v3344_v2 }
  0x65   :  { %2605 = vmatmul.mubr.f32.vlgmr.msra.gmra.mrb[0].mxu0 %v3469_v45  ;;  %v38_v45 = vld [vmem:[%s3909_s4] sm:$0xf] }
  0x66   :  { %3056 = vmatpush3.bf16.msra.mxu0 %v3402_v12  ;;  %2639 = vmatprep.mubr.msk.f32.mxu0 %vm3345_vm0, %v3346_v11 }
  0x67   :  { %3057 = vmatprep.subr.bf16.mxu0 %v3344_v2 }
  0x6a   :  { %3059 = vmatpush3.bf16.msra.mxu0 %v3407_v13 }
  0x6b   :  { %3060 = vmatprep.subr.bf16.mxu0 %v3344_v2 }
  0x6e   :  { %3062 = vmatpush3.bf16.msra.mxu0 %v3417_v18 }
  0x6f   :  { %3063 = vmatprep.subr.bf16.mxu0 %v3344_v2 }
  0x72   :  { %3065 = vmatpush3.bf16.msra.mxu0 %v3444_v30 }
  0x73   :  { %3066 = vmatprep.subr.bf16.mxu0 %v3344_v2 }
  0x76   :  { %3068 = vmatpush3.bf16.msra.mxu0 %v3465_v44 }
  0x77   :  { %3069 = vmatprep.subr.bf16.mxu0 %v3344_v2 }
  0x7a   :  { %3071 = vmatpush3.bf16.msra.mxu0 %v3476_v49 }
  0x7b   :  { %3072 = vmatprep.subr.bf16.mxu0 %v3344_v2 }
  0x7e   :  { %3074 = vmatpush3.bf16.msra.mxu0 %v3478_v50 }
  0x7f   :  { %3075 = vmatprep.subr.bf16.mxu0 %v3344_v2 }
  0x82   :  { %3077 = vmatpush3.bf16.msra.mxu0 %v3480_v51 }
  0x83   :  { %3078 = vmatprep.subr.bf16.mxu0 %v3344_v2 }
  0x85   :  { %2640 = vmatmul.mubr.f32.vlgmr.msra.gmra.mrb[0].mxu0 %v122_v55  ;;  %v687_v55 = vsel %vm685_vm1, %v38_v45, 0 }
  0x86   :  { %3080 = vmatpush3.bf16.msra.mxu0 %v3530_v27  ;;  %2674 = vmatprep.mubr.msk.f32.mxu0 %vm3345_vm0, %v3346_v11  ;;  %v3711_v58 = vand.u32 4294901760, %v687_v55 }
  0x87   :  { %3081 = vmatprep.subr.bf16.mxu0 %v3344_v2 }
  0x88   :  { %2713 = vmatpush3.msra.mxu1 %v3711_v58 }
  0x89   :  { %2717 = vmatprep.subr.mxu1 %v3346_v11 }
  0x8a   :  { %3083 = vmatpush3.bf16.msra.mxu0 %v3532_v28 }
  0x8b   :  { %3084 = vmatprep.subr.bf16.mxu0 %v3344_v2 }
  0x8e   :  { %3086 = vmatpush3.bf16.msra.mxu0 %v3535_v29 }
  0x8f   :  { %3087 = vmatprep.subr.bf16.mxu0 %v3344_v2 }
  0x92   :  { %3089 = vmatpush3.bf16.msra.mxu0 %v3537_v31 }
  0x93   :  { %3090 = vmatprep.subr.bf16.mxu0 %v3344_v2 }
  0x96   :  { %3092 = vmatpush3.bf16.msra.mxu0 %v3539_v32 }
  0x97   :  { %3093 = vmatprep.subr.bf16.mxu0 %v3344_v2 }
  0x9a   :  { %3095 = vmatpush3.bf16.msra.mxu0 %v3541_v36 }
  0x9b   :  { %3096 = vmatprep.subr.bf16.mxu0 %v3344_v2 }
  0x9e   :  { %3098 = vmatpush3.bf16.msra.mxu0 %v3544_v37 }
  0x9f   :  { %3099 = vmatprep.subr.bf16.mxu0 %v3344_v2 }
  0xa2   :  { %3101 = vmatpush3.bf16.msra.mxu0 %v3546_v38 }
  0xa3   :  { %3102 = vmatprep.subr.bf16.mxu0 %v3344_v2 }
  0xa5   :  { %2675 = vmatmul.mubr.f32.vlgmr.msra.gmra.mrb[0].mxu0 %v3453_v33 }
  0xa6   :  { %3104 = vmatpush3.bf16.msra.mxu0 %v3402_v12  ;;  %2709 = vmatprep.mubr.msk.f32.mxu0 %vm3345_vm0, %v3346_v11 }
  0xa7   :  { %3105 = vmatprep.subr.bf16.mxu0 %v3344_v2 }
  0xaa   :  { %3107 = vmatpush3.bf16.msra.mxu0 %v3407_v13 }
  0xab   :  { %3108 = vmatprep.subr.bf16.mxu0 %v3344_v2 }
  0xae   :  { %3110 = vmatpush3.bf16.msra.mxu0 %v3417_v18 }
  0xaf   :  { %3111 = vmatprep.subr.bf16.mxu0 %v3344_v2 }
  0xb2   :  { %3113 = vmatpush3.bf16.msra.mxu0 %v3444_v30 }
  0xb3   :  { %3114 = vmatprep.subr.bf16.mxu0 %v3344_v2 }
  0xb6   :  { %3116 = vmatpush3.bf16.msra.mxu0 %v3465_v44 }
  0xb7   :  { %3117 = vmatprep.subr.bf16.mxu0 %v3344_v2 }
  0xba   :  { %3119 = vmatpush3.bf16.msra.mxu0 %v3476_v49 }
  0xbb   :  { %3120 = vmatprep.subr.bf16.mxu0 %v3344_v2 }
  0xbe   :  { %3122 = vmatpush3.bf16.msra.mxu0 %v3478_v50 }
  0xbf   :  { %3123 = vmatprep.subr.bf16.mxu0 %v3344_v2 }
  0xc2   :  { %3125 = vmatpush3.bf16.msra.mxu0 %v3480_v51 }
  0xc3   :  { %2952 = vmatprep.subr.mxu0 %v3346_v11 }
  0xc5   :  { %2710 = vmatmul.mubr.f32.vlgmr.msra.gmra.mrb[0].mxu0 %v3453_v33  ;;  %v3718_v33 = vsub.f32 %v687_v55, %v3711_v58 }
  0xc6   :  { %2954 = vmatprep.mubr.msk.f32.mxu0 %vm3345_vm0, %v3346_v11  ;;  %2953 = vmatpush3.msra.mxu0 %v3711_v58 }
  0xc7   :  { %2957 = vmatprep.subr.mxu0 %v3346_v11  ;;  %v3722_v0 = vand.u32 4294901760, %v3718_v33 }
  0xc9   :  { %v769_v6 = vsub.f32 %v3718_v33, %v3722_v0 }
  0xcb   :  { %v3726_v14 = vand.u32 4294901760, %v769_v6 }
 0x198   :  { %v676_v60 = vpop.f32.mrb[0].mxu0 }
 0x199   :  { %v680_v61 = vmul.f32 0.03125, %v676_v60  ;;  %v2711_v62 = vpop.f32.mrb[1].mxu0 }
 0x19b   :  { %v683_v63 = vsel %vm681_vm2, %v680_v61, 0 }
 0x19c   :  { %v755_v1 = vand.u32 4294901760, %v683_v63 }
 0x19e   :  { %v756_v3 = vsub.f32 %v683_v63, %v755_v1 }
 0x1a0   :  { %v757_v7 = vand.u32 4294901760, %v756_v3 }
 0x1a2   :  { %v758_v10 = vsub.f32 %v756_v3, %v757_v7 }
 0x1a4   :  { %v759_v15 = vand.u32 4294901760, %v758_v10 }
 0x1a6   :  { %2715 = vmatmul.mubr.f32.vlgmr.msra.gmra.mrb[0].mxu1 %v759_v15 }
 0x1a7   :  { %2718 = vmatpush3.msra.mxu1 %v3726_v14  ;;  %2719 = vmatprep.mubr.msk.f32.mxu1 %vm3345_vm0, %v3346_v11 }
 0x1a8   :  { %2722 = vmatprep.subr.mxu1 %v3346_v11 }
 0x1ae   :  { %2720 = vmatmul.mubr.f32.vlgmr.msra.gmra.mrb[0].mxu1 %v755_v1 }
 0x1af   :  { %2723 = vmatpush3.msra.mxu1 %v3718_v33  ;;  %2724 = vmatprep.mubr.msk.f32.mxu1 %vm3345_vm0, %v3346_v11 }
 0x1b0   :  { %2727 = vmatprep.subr.mxu1 %v3346_v11 }
 0x1b6   :  { %2725 = vmatmul.mubr.f32.vlgmr.msra.gmra.mrb[0].mxu1 %v756_v3 }
 0x1b7   :  { %2728 = vmatpush3.msra.mxu1 %v3711_v58  ;;  %2729 = vmatprep.mubr.msk.f32.mxu1 %vm3345_vm0, %v3346_v11 }
 0x1b8   :  { %2732 = vmatprep.subr.mxu1 %v3346_v11 }
 0x1be   :  { %2730 = vmatmul.mubr.f32.vlgmr.msra.gmra.mrb[0].mxu1 %v757_v7 }
 0x1bf   :  { %2733 = vmatpush3.msra.mxu1 %v3722_v0  ;;  %2734 = vmatprep.mubr.msk.f32.mxu1 %vm3345_vm0, %v3346_v11 }
 0x1c0   :  { %2737 = vmatprep.subr.mxu1 %v3346_v11 }
 0x1c6   :  { %2735 = vmatmul.mubr.f32.vlgmr.msra.gmra.mrb[0].mxu1 %v755_v1 }
 0x1c7   :  { %2738 = vmatpush3.msra.mxu1 %v3711_v58  ;;  %2739 = vmatprep.mubr.msk.f32.mxu1 %vm3345_vm0, %v3346_v11 }
 0x1c8   :  { %3126 = vmatprep.subr.bf16.mxu1 %v3344_v2 }
 0x1ce   :  { %2740 = vmatmul.mubr.f32.vlgmr.msra.gmra.mrb[0].mxu1 %v755_v1 }
 0x1cf   :  { %3128 = vmatpush3.bf16.msra.mxu1 %v3402_v12  ;;  %2774 = vmatprep.mubr.msk.f32.mxu1 %vm3345_vm0, %v3346_v11 }
 0x1d0   :  { %3129 = vmatprep.subr.bf16.mxu1 %v3344_v2 }
 0x1d3   :  { %3131 = vmatpush3.bf16.msra.mxu1 %v3407_v13 }
 0x1d4   :  { %3132 = vmatprep.subr.bf16.mxu1 %v3344_v2 }
 0x1d7   :  { %3134 = vmatpush3.bf16.msra.mxu1 %v3417_v18 }
 0x1d8   :  { %3135 = vmatprep.subr.bf16.mxu1 %v3344_v2 }
 0x1db   :  { %3137 = vmatpush3.bf16.msra.mxu1 %v3444_v30 }
 0x1dc   :  { %3138 = vmatprep.subr.bf16.mxu1 %v3344_v2 }
 0x1df   :  { %3140 = vmatpush3.bf16.msra.mxu1 %v3465_v44 }
 0x1e0   :  { %3141 = vmatprep.subr.bf16.mxu1 %v3344_v2 }
 0x1e3   :  { %3143 = vmatpush3.bf16.msra.mxu1 %v3476_v49 }
 0x1e4   :  { %3144 = vmatprep.subr.bf16.mxu1 %v3344_v2 }
 0x1e7   :  { %3146 = vmatpush3.bf16.msra.mxu1 %v3478_v50 }
 0x1e8   :  { %3147 = vmatprep.subr.bf16.mxu1 %v3344_v2 }
 0x1eb   :  { %3149 = vmatpush3.bf16.msra.mxu1 %v3480_v51 }
 0x1ec   :  { %3150 = vmatprep.subr.bf16.mxu1 %v3344_v2 }
 0x2a1   :  { %v1131_v39 = vpop.f32.mrb[0].mxu1 }
 0x2a2   :  { %v3767_v40 = vsub.f32 %v3429_v23, %v1131_v39  ;;  %v2741_v46 = vpop.f32.mrb[1].mxu1 }
 0x2a4   :  { %v1136_v47 = vmul.f32 %v3767_v40, %v3767_v40 }
 0x2a6   :  { %v3771_v19 = vand.u32 4294901760, %v1136_v47 }
 0x2a8   :  { %v1219_v52 = vsub.f32 %v1136_v47, %v3771_v19 }
 0x2aa   :  { %v1220_v20 = vand.u32 4294901760, %v1219_v52 }
 0x2ac   :  { %v1221_v53 = vsub.f32 %v1219_v52, %v1220_v20 }
 0x2ae   :  { %v1222_v21 = vand.u32 4294901760, %v1221_v53 }
 0x2b0   :  { %2775 = vmatmul.mubr.f32.vlgmr.msra.gmra.mrb[2].mxu1 %v1222_v21 }
 0x2b1   :  { %3152 = vmatpush3.bf16.msra.mxu1 %v3550_v41  ;;  %2809 = vmatprep.mubr.msk.f32.mxu1 %vm3345_vm0, %v3346_v11 }
 0x2b2   :  { %3153 = vmatprep.subr.bf16.mxu1 %v3344_v2 }
 0x2b5   :  { %3155 = vmatpush3.bf16.msra.mxu1 %v3556_v56 }
 0x2b6   :  { %3156 = vmatprep.subr.bf16.mxu1 %v3344_v2 }
 0x2b9   :  { %3158 = vmatpush3.bf16.msra.mxu1 %v3563_v5  ;;  %v2273_v5 = vld [vmem:[%s3907_s2] ss:$0 sm:$0xff] }
 0x2ba   :  { %3159 = vmatprep.subr.bf16.mxu1 %v3344_v2 }
 0x2bd   :  { %3161 = vmatpush3.bf16.msra.mxu1 %v3570_v16 }
 0x2be   :  { %3162 = vmatprep.subr.bf16.mxu1 %v3344_v2 }
 0x2c1   :  { %3164 = vmatpush3.bf16.msra.mxu1 %v3576_v17 }
 0x2c2   :  { %3165 = vmatprep.subr.bf16.mxu1 %v3344_v2 }
 0x2c5   :  { %3167 = vmatpush3.bf16.msra.mxu1 %v3581_v57 }
 0x2c6   :  { %3168 = vmatprep.subr.bf16.mxu1 %v3344_v2 }
 0x2c9   :  { %3170 = vmatpush3.bf16.msra.mxu1 %v3587_v59 }
 0x2ca   :  { %3171 = vmatprep.subr.bf16.mxu1 %v3344_v2 }
 0x2cd   :  { %3173 = vmatpush3.bf16.msra.mxu1 %v3591_v9 }
 0x2ce   :  { %3174 = vmatprep.subr.bf16.mxu1 %v3344_v2 }
 0x2d0   :  { %2810 = vmatmul.mubr.f32.vlgmr.msra.gmra.mrb[2].mxu1 %v3771_v19 }
 0x2d1   :  { %3176 = vmatpush3.bf16.msra.mxu1 %v3597_v25  ;;  %2844 = vmatprep.mubr.msk.f32.mxu1 %vm3345_vm0, %v3346_v11 }
 0x2d2   :  { %3177 = vmatprep.subr.bf16.mxu1 %v3344_v2 }
 0x2d5   :  { %3179 = vmatpush3.bf16.msra.mxu1 %v3604_v26 }
 0x2d6   :  { %3180 = vmatprep.subr.bf16.mxu1 %v3344_v2 }
 0x2d9   :  { %3182 = vmatpush3.bf16.msra.mxu1 %v3612_v34 }
 0x2da   :  { %3183 = vmatprep.subr.bf16.mxu1 %v3344_v2 }
 0x2dd   :  { %3185 = vmatpush3.bf16.msra.mxu1 %v3618_v35 }
 0x2de   :  { %3186 = vmatprep.subr.bf16.mxu1 %v3344_v2 }
 0x2e1   :  { %3188 = vmatpush3.bf16.msra.mxu1 %v3624_v42 }
 0x2e2   :  { %3189 = vmatprep.subr.bf16.mxu1 %v3344_v2 }
 0x2e5   :  { %3191 = vmatpush3.bf16.msra.mxu1 %v3630_v43 }
 0x2e6   :  { %3192 = vmatprep.subr.bf16.mxu1 %v3344_v2 }
 0x2e9   :  { %3194 = vmatpush3.bf16.msra.mxu1 %v3636_v48 }
 0x2ea   :  { %3195 = vmatprep.subr.bf16.mxu1 %v3344_v2 }
 0x2ed   :  { %3197 = vmatpush3.bf16.msra.mxu1 %v3642_v54 }
 0x2ee   :  { %3198 = vmatprep.subr.bf16.mxu1 %v3344_v2 }
 0x2f0   :  { %2845 = vmatmul.mubr.f32.vlgmr.msra.gmra.mrb[2].mxu1 %v1219_v52 }
 0x2f1   :  { %3200 = vmatpush3.bf16.msra.mxu1 %v3402_v12  ;;  %2879 = vmatprep.mubr.msk.f32.mxu1 %vm3345_vm0, %v3346_v11 }
 0x2f2   :  { %3201 = vmatprep.subr.bf16.mxu1 %v3344_v2 }
 0x2f5   :  { %3203 = vmatpush3.bf16.msra.mxu1 %v3407_v13 }
 0x2f6   :  { %3204 = vmatprep.subr.bf16.mxu1 %v3344_v2 }
 0x2f9   :  { %3206 = vmatpush3.bf16.msra.mxu1 %v3417_v18 }
 0x2fa   :  { %3207 = vmatprep.subr.bf16.mxu1 %v3344_v2 }
 0x2fd   :  { %3209 = vmatpush3.bf16.msra.mxu1 %v3444_v30 }
 0x2fe   :  { %3210 = vmatprep.subr.bf16.mxu1 %v3344_v2 }
 0x301   :  { %3212 = vmatpush3.bf16.msra.mxu1 %v3465_v44 }
 0x302   :  { %3213 = vmatprep.subr.bf16.mxu1 %v3344_v2 }
 0x305   :  { %3215 = vmatpush3.bf16.msra.mxu1 %v3476_v49 }
 0x306   :  { %3216 = vmatprep.subr.bf16.mxu1 %v3344_v2 }
 0x309   :  { %3218 = vmatpush3.bf16.msra.mxu1 %v3478_v50 }
 0x30a   :  { %3219 = vmatprep.subr.bf16.mxu1 %v3344_v2 }
 0x30d   :  { %3221 = vmatpush3.bf16.msra.mxu1 %v3480_v51 }
 0x30e   :  { %3222 = vmatprep.subr.bf16.mxu1 %v3344_v2 }
 0x310   :  { %2880 = vmatmul.mubr.f32.vlgmr.msra.gmra.mrb[2].mxu1 %v1220_v20 }
 0x311   :  { %3224 = vmatpush3.bf16.msra.mxu1 %v3530_v27  ;;  %2914 = vmatprep.mubr.msk.f32.mxu1 %vm3345_vm0, %v3346_v11 }
 0x312   :  { %3225 = vmatprep.subr.bf16.mxu1 %v3344_v2 }
 0x315   :  { %3227 = vmatpush3.bf16.msra.mxu1 %v3532_v28 }
 0x316   :  { %3228 = vmatprep.subr.bf16.mxu1 %v3344_v2 }
 0x319   :  { %3230 = vmatpush3.bf16.msra.mxu1 %v3535_v29 }
 0x31a   :  { %3231 = vmatprep.subr.bf16.mxu1 %v3344_v2 }
 0x31d   :  { %3233 = vmatpush3.bf16.msra.mxu1 %v3537_v31 }
 0x31e   :  { %3234 = vmatprep.subr.bf16.mxu1 %v3344_v2 }
 0x321   :  { %3236 = vmatpush3.bf16.msra.mxu1 %v3539_v32 }
 0x322   :  { %3237 = vmatprep.subr.bf16.mxu1 %v3344_v2 }
 0x325   :  { %3239 = vmatpush3.bf16.msra.mxu1 %v3541_v36 }
 0x326   :  { %3240 = vmatprep.subr.bf16.mxu1 %v3344_v2 }
 0x329   :  { %3242 = vmatpush3.bf16.msra.mxu1 %v3544_v37 }
 0x32a   :  { %3243 = vmatprep.subr.bf16.mxu1 %v3344_v2 }
 0x32d   :  { %3245 = vmatpush3.bf16.msra.mxu1 %v3546_v38  ;;  %v2272_v38 = vld [vmem:[%s3906_s1] ss:$0 sm:$0xff] }
 0x32e   :  { %3246 = vmatprep.subr.bf16.mxu1 %v3344_v2 }
 0x330   :  { %2915 = vmatmul.mubr.f32.vlgmr.msra.gmra.mrb[2].mxu1 %v3771_v19 }
 0x331   :  { %3248 = vmatpush3.bf16.msra.mxu1 %v3402_v12  ;;  %2949 = vmatprep.mubr.msk.f32.mxu1 %vm3345_vm0, %v3346_v11 }
 0x332   :  { %3249 = vmatprep.subr.bf16.mxu1 %v3344_v2 }
 0x335   :  { %3251 = vmatpush3.bf16.msra.mxu1 %v3407_v13 }
 0x336   :  { %3252 = vmatprep.subr.bf16.mxu1 %v3344_v2 }
 0x339   :  { %3254 = vmatpush3.bf16.msra.mxu1 %v3417_v18 }
 0x33a   :  { %3255 = vmatprep.subr.bf16.mxu1 %v3344_v2 }
 0x33d   :  { %3257 = vmatpush3.bf16.msra.mxu1 %v3444_v30 }
 0x33e   :  { %3258 = vmatprep.subr.bf16.mxu1 %v3344_v2 }
 0x341   :  { %3260 = vmatpush3.bf16.msra.mxu1 %v3465_v44 }
 0x342   :  { %3261 = vmatprep.subr.bf16.mxu1 %v3344_v2 }
 0x345   :  { %3263 = vmatpush3.bf16.msra.mxu1 %v3476_v49 }
 0x346   :  { %3264 = vmatprep.subr.bf16.mxu1 %v3344_v2 }
 0x349   :  { %3266 = vmatpush3.bf16.msra.mxu1 %v3478_v50 }
 0x34a   :  { %3267 = vmatprep.subr.bf16.mxu1 %v3344_v2 }
 0x34d   :  { %3269 = vmatpush3.bf16.msra.mxu1 %v3480_v51 }
 0x350   :  { %2950 = vmatmul.mubr.f32.vlgmr.msra.gmra.mrb[2].mxu1 %v3771_v19 }
 0x423   :  { %v1774_v12 = vpop.f32.mrb[2].mxu1 }
 0x424   :  { %v1779_v13 = vmul.f32 0.032258064, %v1774_v12  ;;  %v2951_v18 = vpop.f32.mrb[3].mxu1 }
 0x426   :  { %3316 = vrsqrt.f32 %v1779_v13  ;;  %vm1782_vm3 = vcmp.eq.f32.partialorder %v1779_v13, inf  ;;  %v1785_v44 = vand.u32 2147483648, %v1779_v13  ;;  %vm1784_vm4 = vcmp.eq.f32.partialorder %v1779_v13, 0.0 }
 0x430   :  { %v3317_v23 = vpop.eup %3316 }
 0x431   :  { %v1781_v30 = vmul.f32 %v3317_v23, %v1779_v13 }
 0x433   :  { %v1783_v27 = vsel %vm1782_vm3, %v1779_v13, %v1781_v30 }
 0x434   :  { %v1786_v49 = vsel %vm1784_vm4, %v1785_v44, %v1783_v27 }
 0x435   :  { %v1787_v28 = vadd.f32 1e-07, %v1786_v49 }
 0x437   :  { %3318 = vrcp.f32 %v1787_v28 }
 0x441   :  { %v3319_v50 = vpop.eup %3318 }
 0x442   :  { %v1790_v2 = vsel %vm681_vm2, %v3319_v50, 0 }
 0x443   :  { %v1858_v29 = vand.u32 4294901760, %v1790_v2 }
 0x445   :  { %v1859_v51 = vsub.f32 %v1790_v2, %v1858_v29 }
 0x447   :  { %v1860_v31 = vand.u32 4294901760, %v1859_v51 }
 0x449   :  { %v1861_v32 = vsub.f32 %v1859_v51, %v1860_v31 }
 0x44b   :  { %v1862_v36 = vand.u32 4294901760, %v1861_v32 }
 0x44d   :  { %2955 = vmatmul.mubr.f32.vlgmr.msra.gmra.mrb[2].mxu0 %v1862_v36 }
 0x44e   :  { %2958 = vmatpush3.msra.mxu0 %v3726_v14  ;;  %2959 = vmatprep.mubr.msk.f32.mxu0 %vm3345_vm0, %v3346_v11 }
 0x44f   :  { %2962 = vmatprep.subr.mxu0 %v3346_v11 }
 0x455   :  { %2960 = vmatmul.mubr.f32.vlgmr.msra.gmra.mrb[2].mxu0 %v1858_v29 }
 0x456   :  { %2963 = vmatpush3.msra.mxu0 %v3718_v33  ;;  %2964 = vmatprep.mubr.msk.f32.mxu0 %vm3345_vm0, %v3346_v11 }
 0x457   :  { %2967 = vmatprep.subr.mxu0 %v3346_v11 }
 0x45d   :  { %2965 = vmatmul.mubr.f32.vlgmr.msra.gmra.mrb[2].mxu0 %v1859_v51 }
 0x45e   :  { %2968 = vmatpush3.msra.mxu0 %v3711_v58  ;;  %2969 = vmatprep.mubr.msk.f32.mxu0 %vm3345_vm0, %v3346_v11 }
 0x45f   :  { %2972 = vmatprep.subr.mxu0 %v3346_v11 }
 0x465   :  { %2970 = vmatmul.mubr.f32.vlgmr.msra.gmra.mrb[2].mxu0 %v1860_v31 }
 0x466   :  { %2973 = vmatpush3.msra.mxu0 %v3722_v0  ;;  %2974 = vmatprep.mubr.msk.f32.mxu0 %vm3345_vm0, %v3346_v11 }
 0x467   :  { %2977 = vmatprep.subr.mxu0 %v3346_v11 }
 0x46d   :  { %2975 = vmatmul.mubr.f32.vlgmr.msra.gmra.mrb[2].mxu0 %v1858_v29 }
 0x46e   :  { %2978 = vmatpush3.msra.mxu0 %v3711_v58  ;;  %2979 = vmatprep.mubr.msk.f32.mxu0 %vm3345_vm0, %v3346_v11 }
 0x475   :  { %2980 = vmatmul.mubr.f32.vlgmr.msra.gmra.mrb[2].mxu0 %v1858_v29 }
 0x548   :  { %v2234_v37 = vpop.f32.mrb[2].mxu0 }
 0x549   :  { %v2240_v41 = vmul.f32 %v2234_v37, %v3767_v40  ;;  %v2981_v56 = vpop.f32.mrb[3].mxu0 }
 0x54b   :  { %v2247_v16 = vmul.f32 %v2272_v38, %v2240_v41 }
 0x54d   :  { %v2254_v17 = vadd.f32 %v2273_v5, %v2247_v16 }
 0x54f   :  { %2255 = vst [vmem:[#allocation2] sm:$0xff] %v2254_v17 }
 0x550   :  { %2260 = vsyncadd [#allocation3], 64  ;;  %s3347_s30 = smov [#allocation2]  }
 0x551   :  { %s2261_s6 = sshll.u32 %s3347_s30, 4  ;;  %s2262_s6 = int_to_ptr.vmem [resolvable:$true] %s2261_s6 }
 0x552   :  { %s3320_s7 = scalar_lea.vmem %s2262_s6, 64  ;;  %s3324_s8 = scalar_lea.vmem %s2262_s6, 128 }
 0x553   :  { %p3321_p0 = scmp.ne.s32.totalorder %s2262_s6, %s3320_s7  ;;  %p3325_p1 = scmp.lt.s32.totalorder %s2262_s6, %s2262_s6 }
 0x554   :  { %p3326_p2 = scmp.lt.s32.totalorder %s3324_s8, %s3320_s7 }
 0x556   :  { %p3327_p3 = por %p3326_p2, %p3325_p1 }
 0x558   :  { %p3328_p4 = pnand %p3327_p3, %p3321_p0 }
 0x55a   :  { %3331 = shalt.err (!%p3328_p4)
}
 0x55b   :  { %s3332_s10 = scalar_lea.hbm %s3910_s5, 64 }
 0x55c   :  { %p3333_p5 = scmp.ne.s32.totalorder %s3910_s5, %s3332_s10  ;;  %p3336_p6 = scmp.lt.u32.totalorder %s3332_s10, %s3910_s5 }
 0x55e   :  { %p3338_p7 = pnand %p3336_p6, %p3333_p5 }
 0x560   :  { %3341 = shalt.err (!%p3338_p7)
}
 0x561   :  { %s3348_s14 = smov 64   ;;  %s3349_s15 = smov 4  }
 0x562   :  { %2267 = dma.vmem_to_hbm [thread:$0]  %s2262_s6, 64, %s3910_s5, [#allocation3], %s3348_s14, %s3348_s14, %s3349_s15  }
 0x563   :  { %3342 = dma.done.wait [#allocation3], 128  }
 0x564   :  { %3343 = vsyncadd [#allocation3], 4294967168 }
 0x565   :  { %2271 = vsyncpa [#allocation3], 1 }

</bundles_post_ra>
